<compile_context>
chip_gen: v7x
topology: tpu7x:2x2x1
jax: 0.10.0
libtpu: 0.0.40
codegen_flags: <defaults>
</compile_context>

<pallas_src>
import functools

import jax
import jax.numpy as jnp
from jax import lax
from jax.experimental import pallas as pl
from jax.experimental.pallas import tpu as pltpu


# ---------------------------------------------------------------------------
# Fused kernel: expand(1x1)+BN+ReLU6 -> depthwise 3x3+BN+ReLU6 -> project(1x1)+BN
#               -> residual add.   Works on B_img images per grid step.
# ---------------------------------------------------------------------------
def _fused_kernel(x_ref, w1_ref, b1_ref, wm_ref, b2_ref, w3_ref, b3_ref,
                  o_ref, *, W, HW):
    x = x_ref[...]                                        # (B, Cin, HW) lane-dense
    B = x.shape[0]
    hid, Cin = w1_ref.shape
    Cout = w3_ref.shape[0]

    # 1x1 expand conv (BN1 scale folded into w1) + bias + ReLU6 -> (B, hid, HW).
    # Broadcast the tiny weight over batch so the contraction is a standard
    # batched matmul (no output transpose).  Done once per step, outside loops.
    w1b = jnp.broadcast_to(w1_ref[...], (B, hid, Cin))
    h = jnp.einsum('bhc,bcl->bhl', w1b, x, preferred_element_type=jnp.float32)
    h = jnp.clip(h + b1_ref[...], 0.0, 6.0)

    # 3x3 depthwise conv, stride=1, padding=1.
    # wm[k] = BN2-scaled tap weight, pre-masked by the zero-padding validity
    # pattern and pre-broadcast over the flattened spatial axis (host-side).
    # acc starts at the folded BN2 bias (saves a full-tile add).
    wm = wm_ref[...]                                      # (9, hid, HW)
    acc = jnp.broadcast_to(b2_ref[...], h.shape)          # (B, hid, HW)
    k = 0
    for dy in (-1, 0, 1):
        for dx in (-1, 0, 1):
            s = dy * W + dx                               # flattened lane shift
            tap = h if s == 0 else pltpu.roll(h, (-s) % HW, axis=2)
            acc = acc + tap * wm[k]
            k += 1
    acc = jnp.clip(acc, 0.0, 6.0)

    # 1x1 project conv (BN3 scale folded, no activation) + bias + residual add.
    w3b = jnp.broadcast_to(w3_ref[...], (B, Cout, hid))
    p = jnp.einsum('boh,bhl->bol', w3b, acc, preferred_element_type=jnp.float32)
    o_ref[...] = (x + p + b3_ref[...]).astype(o_ref.dtype)


def _default_vmem_limit():
    # Raise the scoped-VMEM default (16/32 MiB) while staying under v7x's
    # 64 MiB physical VMEM; use more headroom on v5e/v6e (128 MiB physical).
    try:
        cap = pltpu.get_tpu_info().vmem_capacity_bytes
        return int(min(0.75 * cap, 96 * 1024 * 1024))
    except Exception:
        return 48 * 1024 * 1024


# ---------------------------------------------------------------------------
# Wrapper
# ---------------------------------------------------------------------------
def inverted_residual(x_nchw, params, *, stride=1, b_img_cap=256):
    # TODO(synk): stride=2 path (no residual connection) not implemented in-kernel.
    assert stride == 1
    N, Cin, H, W = x_nchw.shape
    HW = H * W
    hid = params["w1t"].shape[0]
    Cout = params["w3t"].shape[0]
    assert Cin == Cout                                    # use_res_connect case

    # Images per grid step: big enough to amortize per-step overhead, capped so
    # the tile (+ f32 intermediates) stays well inside v7x's 64 MiB VMEM, and
    # chosen so the grid has >= 2 steps when possible (both v7x TCs get work).
    B = max(1, min(b_img_cap, pl.cdiv(N, 2)))
    n_steps = pl.cdiv(N, B)
    N_pad = n_steps * B

    x = x_nchw.reshape(N, Cin, HW)                        # channels-major, lane-dense
    if N_pad != N:
        x = jnp.pad(x, ((0, N_pad - N), (0, 0), (0, 0)))

    param_bytes = sum(int(v.size) * 4 for v in params.values())
    cost = pl.CostEstimate(
        flops=2 * N * HW * (Cin * hid + 9 * hid + hid * Cout),
        transcendentals=0,
        bytes_accessed=(x.size + N_pad * Cout * HW) * 4 + param_bytes)

    out = pl.pallas_call(
        functools.partial(_fused_kernel, W=W, HW=HW),
        out_shape=jax.ShapeDtypeStruct((N_pad, Cout, HW), x.dtype),
        grid=(n_steps,),
        in_specs=[
            pl.BlockSpec((B, Cin, HW), lambda n: (n, 0, 0)),
            pl.BlockSpec((hid, Cin), lambda n: (0, 0)),
            pl.BlockSpec((hid, 1), lambda n: (0, 0)),
            pl.BlockSpec((9, hid, HW), lambda n: (0, 0, 0)),   # constant -> DMA'd once
            pl.BlockSpec((hid, 1), lambda n: (0, 0)),
            pl.BlockSpec((Cout, hid), lambda n: (0, 0)),
            pl.BlockSpec((Cout, 1), lambda n: (0, 0)),
        ],
        out_specs=pl.BlockSpec((B, Cout, HW), lambda n: (n, 0, 0)),
        compiler_params=pltpu.CompilerParams(
            dimension_semantics=("parallel",),            # image-blocks are independent
            vmem_limit_bytes=_default_vmem_limit()),
        cost_estimate=cost,
    )(x, params["w1t"], params["b1"], params["wm"], params["b2"],
      params["w3t"], params["b3"])

    if N_pad != N:
        out = out[:N]
    return out.reshape(N, Cout, H, W)


# ---------------------------------------------------------------------------
# Host-side param prep: fold inference BatchNorm into conv weights + biases,
# and pre-build the 9 masked & spatially-broadcast depthwise weight planes.
# ---------------------------------------------------------------------------
def fold_params(raw, H, W, eps=1e-5):
    def fold(g, b, m, v):
        s = g / jnp.sqrt(v + eps)
        return s, b - m * s

    s1, b1 = fold(raw["gamma1"], raw["beta1"], raw["mean1"], raw["var1"])
    s2, b2 = fold(raw["gamma2"], raw["beta2"], raw["mean2"], raw["var2"])
    s3, b3 = fold(raw["gamma3"], raw["beta3"], raw["mean3"], raw["var3"])
    hid = raw["w1"].shape[0]
    HW = H * W

    # Depthwise: BN2 scale folded per channel, then each of the 9 taps is
    # pre-multiplied by its zero-padding validity mask over the flattened
    # spatial axis -> (9, hid, HW).  Keeps all mask/broadcast work off the VPU.
    wdw = raw["wdw"].reshape(hid, 9) * s2[:, None]
    pos = jnp.arange(HW, dtype=jnp.int32)
    py, px = pos // W, pos % W
    planes = []
    for dy in (-1, 0, 1):
        for dx in (-1, 0, 1):
            k = (dy + 1) * 3 + (dx + 1)
            valid = ((py + dy >= 0) & (py + dy < H) &
                     (px + dx >= 0) & (px + dx < W)).astype(jnp.float32)
            planes.append(wdw[:, k][:, None] * valid[None, :])      # (hid, HW)
    wm = jnp.stack(planes, axis=0)                                   # (9, hid, HW)

    return {
        # PyTorch [hid, Cin, 1, 1] -> (hid, Cin), BN1 scale folded per out-channel.
        "w1t": raw["w1"][:, :, 0, 0] * s1[:, None],
        "b1": b1[:, None],
        "wm": wm,
        "b2": b2[:, None],
        # PyTorch [Cout, hid, 1, 1] -> (Cout, hid), BN3 scale folded per out-channel.
        "w3t": raw["w3"][:, :, 0, 0] * s3[:, None],
        "b3": b3[:, None],
    }


# ---------------------------------------------------------------------------
# Pure-JAX reference (NCHW, unfolded params) for correctness check.
# ---------------------------------------------------------------------------
def reference(x, raw, eps=1e-5):
    def bn(z, g, b, m, v):
        s = g / jnp.sqrt(v + eps)
        return z * s[None, :, None, None] + (b - m * s)[None, :, None, None]

    conv = functools.partial(
        lax.conv_general_dilated, window_strides=(1, 1),
        dimension_numbers=("NCHW", "OIHW", "NCHW"))

    h = conv(x, raw["w1"], padding=[(0, 0), (0, 0)])
    h = jnp.clip(bn(h, raw["gamma1"], raw["beta1"], raw["mean1"], raw["var1"]), 0.0, 6.0)
    dw = conv(h, raw["wdw"], padding=[(1, 1), (1, 1)],
              feature_group_count=h.shape[1])
    dw = jnp.clip(bn(dw, raw["gamma2"], raw["beta2"], raw["mean2"], raw["var2"]), 0.0, 6.0)
    pr = conv(dw, raw["w3"], padding=[(0, 0), (0, 0)])
    pr = bn(pr, raw["gamma3"], raw["beta3"], raw["mean3"], raw["var3"])
    return x + pr


if __name__ == "__main__":
    # Module config: inp=4, oup=4, stride=1, expand_ratio=4 -> hidden_dim=16.
    N, Cin, Cout, H, W = 2, 4, 4, 16, 16
    expand_ratio = 4
    hid = int(round(Cin * expand_ratio))

    key = jax.random.PRNGKey(0)
    ks = jax.random.split(key, 7)

    def bn_raw(i, c, k0):
        kk = jax.random.split(ks[k0], 4)
        return {
            f"gamma{i}": 1.0 + 0.1 * jax.random.normal(kk[0], (c,), jnp.float32),
            f"beta{i}": 0.1 * jax.random.normal(kk[1], (c,), jnp.float32),
            f"mean{i}": 0.1 * jax.random.normal(kk[2], (c,), jnp.float32),
            f"var{i}": jnp.abs(jax.random.normal(kk[3], (c,), jnp.float32)) + 0.5,
        }

    raw = {
        "w1": 0.2 * jax.random.normal(ks[0], (hid, Cin, 1, 1), jnp.float32),
        "wdw": 0.2 * jax.random.normal(ks[1], (hid, 1, 3, 3), jnp.float32),
        "w3": 0.2 * jax.random.normal(ks[2], (Cout, hid, 1, 1), jnp.float32),
        **bn_raw(1, hid, 3), **bn_raw(2, hid, 4), **bn_raw(3, Cout, 5),
    }

    x = jax.random.normal(ks[6], (N, Cin, H, W), jnp.float32)

    params = fold_params(raw, H, W)
    out = inverted_residual(x, params, stride=1)
    out = jax.block_until_ready(out)

    ref = reference(x, raw)
    assert out.shape == (N, Cout, H, W)
    err = float(jnp.max(jnp.abs(out - ref)))
    assert err < 2e-4, f"max abs err {err}"

    print("KERNEL_OK")
</pallas_src>

<mosaic_0001>
module attributes {stable_mosaic.version = 11 : i64} {
  func.func @_fused_kernel(%arg0: i32, %arg1: memref<1x4x256xf32, #tpu.memory_space<vmem>>, %arg2: memref<16x4xf32, #tpu.memory_space<vmem>>, %arg3: memref<16x1xf32, #tpu.memory_space<vmem>>, %arg4: memref<9x16x256xf32, #tpu.memory_space<vmem>>, %arg5: memref<16x1xf32, #tpu.memory_space<vmem>>, %arg6: memref<4x16xf32, #tpu.memory_space<vmem>>, %arg7: memref<4x1xf32, #tpu.memory_space<vmem>>, %arg8: memref<1x4x256xf32, #tpu.memory_space<vmem>>) attributes {dimension_semantics = [#tpu.dimension_semantics<parallel>], iteration_bounds = array<i64: 2>, scalar_prefetch = 0 : i64, scratch_operands = 0 : i64, tpu.core_type = #tpu.core_type<tc>, window_params = [{transform_indices = @transform_0, window_bounds = array<i64: 1, 4, 256>}, {pipeline_mode = #tpu.pipeline_mode<synchronous>, transform_indices = @transform_1, window_bounds = array<i64: 16, 4>}, {pipeline_mode = #tpu.pipeline_mode<synchronous>, transform_indices = @transform_2, window_bounds = array<i64: 16, 1>}, {pipeline_mode = #tpu.pipeline_mode<synchronous>, transform_indices = @transform_3, window_bounds = array<i64: 9, 16, 256>}, {pipeline_mode = #tpu.pipeline_mode<synchronous>, transform_indices = @transform_4, window_bounds = array<i64: 16, 1>}, {pipeline_mode = #tpu.pipeline_mode<synchronous>, transform_indices = @transform_5, window_bounds = array<i64: 4, 16>}, {pipeline_mode = #tpu.pipeline_mode<synchronous>, transform_indices = @transform_6, window_bounds = array<i64: 4, 1>}, {transform_indices = @transform_7, window_bounds = array<i64: 1, 4, 256>}]} {
    %c0 = arith.constant 0 : index
    %c0_0 = arith.constant 0 : index
    %c0_1 = arith.constant 0 : index
    %0 = vector.load %arg1[%c0, %c0_0, %c0_1] : memref<1x4x256xf32, #tpu.memory_space<vmem>>, vector<1x4x256xf32>
    %c0_2 = arith.constant 0 : index
    %c0_3 = arith.constant 0 : index
    %1 = vector.load %arg2[%c0_2, %c0_3] : memref<16x4xf32, #tpu.memory_space<vmem>>, vector<16x4xf32>
    %2 = vector.shape_cast %1 : vector<16x4xf32> to vector<1x16x4xf32>
    "tpu.trace_start"() <{level = 10 : i32, message = "bhc,bcl->bhl"}> : () -> ()
    %cst = arith.constant dense<0.000000e+00> : vector<1x16x256xf32>
    %3 = tpu.matmul %2, %0, %cst {dimension_numbers = #tpu.dot_dimension_numbers<[2], [1], [1], [2], [0, 0, 0, 1, 1, 2], [0], [0]>} : vector<1x16x4xf32>, vector<1x4x256xf32>, vector<1x16x256xf32> -> vector<1x16x256xf32>
    "tpu.trace_stop"() : () -> ()
    %c0_4 = arith.constant 0 : index
    %c0_5 = arith.constant 0 : index
    %4 = vector.load %arg3[%c0_4, %c0_5] : memref<16x1xf32, #tpu.memory_space<vmem>>, vector<16x1xf32>
    %5 = vector.shape_cast %4 : vector<16x1xf32> to vector<1x16x1xf32>
    %6 = vector.broadcast %5 : vector<1x16x1xf32> to vector<1x16x256xf32>
    %7 = arith.addf %3, %6 : vector<1x16x256xf32>
    %cst_6 = arith.constant 0.000000e+00 : f32
    %cst_7 = arith.constant 6.000000e+00 : f32
    %8 = vector.broadcast %cst_6 : f32 to vector<1x16x256xf32>
    %9 = arith.maximumf %8, %7 : vector<1x16x256xf32>
    %10 = vector.broadcast %cst_7 : f32 to vector<1x16x256xf32>
    %11 = arith.minimumf %10, %9 : vector<1x16x256xf32>
    %c0_8 = arith.constant 0 : index
    %c0_9 = arith.constant 0 : index
    %c0_10 = arith.constant 0 : index
    %12 = vector.load %arg4[%c0_8, %c0_9, %c0_10] : memref<9x16x256xf32, #tpu.memory_space<vmem>>, vector<9x16x256xf32>
    %c0_11 = arith.constant 0 : index
    %c0_12 = arith.constant 0 : index
    %13 = vector.load %arg5[%c0_11, %c0_12] : memref<16x1xf32, #tpu.memory_space<vmem>>, vector<16x1xf32>
    %14 = vector.shape_cast %13 : vector<16x1xf32> to vector<1x16x1xf32>
    %15 = vector.broadcast %14 : vector<1x16x1xf32> to vector<1x16x256xf32>
    %c17_i32 = arith.constant 17 : i32
    %16 = tpu.dynamic_rotate %11 by %c17_i32 dim 2 : vector<1x16x256xf32>, i32 -> vector<1x16x256xf32>
    %17 = vector.extract_strided_slice %12 {offsets = [0, 0, 0], sizes = [1, 16, 256], strides = [1, 1, 1]} : vector<9x16x256xf32> to vector<1x16x256xf32>
    %18 = vector.shape_cast %17 : vector<1x16x256xf32> to vector<16x256xf32>
    %19 = vector.shape_cast %18 : vector<16x256xf32> to vector<1x16x256xf32>
    %20 = arith.mulf %16, %19 : vector<1x16x256xf32>
    %21 = arith.addf %15, %20 : vector<1x16x256xf32>
    %c16_i32 = arith.constant 16 : i32
    %22 = tpu.dynamic_rotate %11 by %c16_i32 dim 2 : vector<1x16x256xf32>, i32 -> vector<1x16x256xf32>
    %23 = vector.extract_strided_slice %12 {offsets = [1, 0, 0], sizes = [1, 16, 256], strides = [1, 1, 1]} : vector<9x16x256xf32> to vector<1x16x256xf32>
    %24 = vector.shape_cast %23 : vector<1x16x256xf32> to vector<16x256xf32>
    %25 = vector.shape_cast %24 : vector<16x256xf32> to vector<1x16x256xf32>
    %26 = arith.mulf %22, %25 : vector<1x16x256xf32>
    %27 = arith.addf %21, %26 : vector<1x16x256xf32>
    %c15_i32 = arith.constant 15 : i32
    %28 = tpu.dynamic_rotate %11 by %c15_i32 dim 2 : vector<1x16x256xf32>, i32 -> vector<1x16x256xf32>
    %29 = vector.extract_strided_slice %12 {offsets = [2, 0, 0], sizes = [1, 16, 256], strides = [1, 1, 1]} : vector<9x16x256xf32> to vector<1x16x256xf32>
    %30 = vector.shape_cast %29 : vector<1x16x256xf32> to vector<16x256xf32>
    %31 = vector.shape_cast %30 : vector<16x256xf32> to vector<1x16x256xf32>
    %32 = arith.mulf %28, %31 : vector<1x16x256xf32>
    %33 = arith.addf %27, %32 : vector<1x16x256xf32>
    %c1_i32 = arith.constant 1 : i32
    %34 = tpu.dynamic_rotate %11 by %c1_i32 dim 2 : vector<1x16x256xf32>, i32 -> vector<1x16x256xf32>
    %35 = vector.extract_strided_slice %12 {offsets = [3, 0, 0], sizes = [1, 16, 256], strides = [1, 1, 1]} : vector<9x16x256xf32> to vector<1x16x256xf32>
    %36 = vector.shape_cast %35 : vector<1x16x256xf32> to vector<16x256xf32>
    %37 = vector.shape_cast %36 : vector<16x256xf32> to vector<1x16x256xf32>
    %38 = arith.mulf %34, %37 : vector<1x16x256xf32>
    %39 = arith.addf %33, %38 : vector<1x16x256xf32>
    %40 = vector.extract_strided_slice %12 {offsets = [4, 0, 0], sizes = [1, 16, 256], strides = [1, 1, 1]} : vector<9x16x256xf32> to vector<1x16x256xf32>
    %41 = vector.shape_cast %40 : vector<1x16x256xf32> to vector<16x256xf32>
    %42 = vector.shape_cast %41 : vector<16x256xf32> to vector<1x16x256xf32>
    %43 = arith.mulf %11, %42 : vector<1x16x256xf32>
    %44 = arith.addf %39, %43 : vector<1x16x256xf32>
    %c255_i32 = arith.constant 255 : i32
    %45 = tpu.dynamic_rotate %11 by %c255_i32 dim 2 : vector<1x16x256xf32>, i32 -> vector<1x16x256xf32>
    %46 = vector.extract_strided_slice %12 {offsets = [5, 0, 0], sizes = [1, 16, 256], strides = [1, 1, 1]} : vector<9x16x256xf32> to vector<1x16x256xf32>
    %47 = vector.shape_cast %46 : vector<1x16x256xf32> to vector<16x256xf32>
    %48 = vector.shape_cast %47 : vector<16x256xf32> to vector<1x16x256xf32>
    %49 = arith.mulf %45, %48 : vector<1x16x256xf32>
    %50 = arith.addf %44, %49 : vector<1x16x256xf32>
    %c241_i32 = arith.constant 241 : i32
    %51 = tpu.dynamic_rotate %11 by %c241_i32 dim 2 : vector<1x16x256xf32>, i32 -> vector<1x16x256xf32>
    %52 = vector.extract_strided_slice %12 {offsets = [6, 0, 0], sizes = [1, 16, 256], strides = [1, 1, 1]} : vector<9x16x256xf32> to vector<1x16x256xf32>
    %53 = vector.shape_cast %52 : vector<1x16x256xf32> to vector<16x256xf32>
    %54 = vector.shape_cast %53 : vector<16x256xf32> to vector<1x16x256xf32>
    %55 = arith.mulf %51, %54 : vector<1x16x256xf32>
    %56 = arith.addf %50, %55 : vector<1x16x256xf32>
    %c240_i32 = arith.constant 240 : i32
    %57 = tpu.dynamic_rotate %11 by %c240_i32 dim 2 : vector<1x16x256xf32>, i32 -> vector<1x16x256xf32>
    %58 = vector.extract_strided_slice %12 {offsets = [7, 0, 0], sizes = [1, 16, 256], strides = [1, 1, 1]} : vector<9x16x256xf32> to vector<1x16x256xf32>
    %59 = vector.shape_cast %58 : vector<1x16x256xf32> to vector<16x256xf32>
    %60 = vector.shape_cast %59 : vector<16x256xf32> to vector<1x16x256xf32>
    %61 = arith.mulf %57, %60 : vector<1x16x256xf32>
    %62 = arith.addf %56, %61 : vector<1x16x256xf32>
    %c239_i32 = arith.constant 239 : i32
    %63 = tpu.dynamic_rotate %11 by %c239_i32 dim 2 : vector<1x16x256xf32>, i32 -> vector<1x16x256xf32>
    %64 = vector.extract_strided_slice %12 {offsets = [8, 0, 0], sizes = [1, 16, 256], strides = [1, 1, 1]} : vector<9x16x256xf32> to vector<1x16x256xf32>
    %65 = vector.shape_cast %64 : vector<1x16x256xf32> to vector<16x256xf32>
    %66 = vector.shape_cast %65 : vector<16x256xf32> to vector<1x16x256xf32>
    %67 = arith.mulf %63, %66 : vector<1x16x256xf32>
    %68 = arith.addf %62, %67 : vector<1x16x256xf32>
    %cst_13 = arith.constant 0.000000e+00 : f32
    %cst_14 = arith.constant 6.000000e+00 : f32
    %69 = vector.broadcast %cst_13 : f32 to vector<1x16x256xf32>
    %70 = arith.maximumf %69, %68 : vector<1x16x256xf32>
    %71 = vector.broadcast %cst_14 : f32 to vector<1x16x256xf32>
    %72 = arith.minimumf %71, %70 : vector<1x16x256xf32>
    %c0_15 = arith.constant 0 : index
    %c0_16 = arith.constant 0 : index
    %73 = vector.load %arg6[%c0_15, %c0_16] : memref<4x16xf32, #tpu.memory_space<vmem>>, vector<4x16xf32>
    %74 = vector.shape_cast %73 : vector<4x16xf32> to vector<1x4x16xf32>
    "tpu.trace_start"() <{level = 10 : i32, message = "boh,bhl->bol"}> : () -> ()
    %cst_17 = arith.constant dense<0.000000e+00> : vector<1x4x256xf32>
    %75 = tpu.matmul %74, %72, %cst_17 {dimension_numbers = #tpu.dot_dimension_numbers<[2], [1], [1], [2], [0, 0, 0, 1, 1, 2], [0], [0]>} : vector<1x4x16xf32>, vector<1x16x256xf32>, vector<1x4x256xf32> -> vector<1x4x256xf32>
    "tpu.trace_stop"() : () -> ()
    %76 = arith.addf %0, %75 : vector<1x4x256xf32>
    %c0_18 = arith.constant 0 : index
    %c0_19 = arith.constant 0 : index
    %77 = vector.load %arg7[%c0_18, %c0_19] : memref<4x1xf32, #tpu.memory_space<vmem>>, vector<4x1xf32>
    %78 = vector.shape_cast %77 : vector<4x1xf32> to vector<1x4x1xf32>
    %79 = vector.broadcast %78 : vector<1x4x1xf32> to vector<1x4x256xf32>
    %80 = arith.addf %76, %79 : vector<1x4x256xf32>
    %c0_20 = arith.constant 0 : index
    %c0_21 = arith.constant 0 : index
    %c0_22 = arith.constant 0 : index
    %81 = vector.load %arg8[%c0_20, %c0_21, %c0_22] : memref<1x4x256xf32, #tpu.memory_space<vmem>>, vector<1x4x256xf32>
    tpu.vector_store %arg8[%c0_20, %c0_21, %c0_22], %80 {strides = array<i32>} : memref<1x4x256xf32, #tpu.memory_space<vmem>>, vector<1x4x256xf32>,
    return
  }
  func.func @transform_0(%arg0: i32) -> (i32, i32, i32) {
    %c0_i32 = arith.constant 0 : i32
    %c0_i32_0 = arith.constant 0 : i32
    %c0_i32_1 = arith.constant 0 : i32
    return %arg0, %c0_i32, %c0_i32_0 : i32, i32, i32
  }
  func.func @transform_1(%arg0: i32) -> (i32, i32) {
    %c0_i32 = arith.constant 0 : i32
    %c0_i32_0 = arith.constant 0 : i32
    %c0_i32_1 = arith.constant 0 : i32
    return %c0_i32, %c0_i32_0 : i32, i32
  }
  func.func @transform_2(%arg0: i32) -> (i32, i32) {
    %c0_i32 = arith.constant 0 : i32
    %c0_i32_0 = arith.constant 0 : i32
    %c0_i32_1 = arith.constant 0 : i32
    return %c0_i32, %c0_i32_0 : i32, i32
  }
  func.func @transform_3(%arg0: i32) -> (i32, i32, i32) {
    %c0_i32 = arith.constant 0 : i32
    %c0_i32_0 = arith.constant 0 : i32
    %c0_i32_1 = arith.constant 0 : i32
    %c0_i32_2 = arith.constant 0 : i32
    return %c0_i32, %c0_i32_0, %c0_i32_1 : i32, i32, i32
  }
  func.func @transform_4(%arg0: i32) -> (i32, i32) {
    %c0_i32 = arith.constant 0 : i32
    %c0_i32_0 = arith.constant 0 : i32
    %c0_i32_1 = arith.constant 0 : i32
    return %c0_i32, %c0_i32_0 : i32, i32
  }
  func.func @transform_5(%arg0: i32) -> (i32, i32) {
    %c0_i32 = arith.constant 0 : i32
    %c0_i32_0 = arith.constant 0 : i32
    %c0_i32_1 = arith.constant 0 : i32
    return %c0_i32, %c0_i32_0 : i32, i32
  }
  func.func @transform_6(%arg0: i32) -> (i32, i32) {
    %c0_i32 = arith.constant 0 : i32
    %c0_i32_0 = arith.constant 0 : i32
    %c0_i32_1 = arith.constant 0 : i32
    return %c0_i32, %c0_i32_0 : i32, i32
  }
  func.func @transform_7(%arg0: i32) -> (i32, i32, i32) {
    %c0_i32 = arith.constant 0 : i32
    %c0_i32_0 = arith.constant 0 : i32
    %c0_i32_1 = arith.constant 0 : i32
    return %arg0, %c0_i32, %c0_i32_0 : i32, i32, i32
  }
}

</mosaic_0001>

<bundles_post_ra>
// kernel: tpu_custom_call.1
= control target key start
LH: loop header
LB: loop body
LE: loop exit
PB: predicated region body
PF: predicated region fallthrough
CT: control target
= control target key end

     0   :  { %12 = vsyncpa [#allocation3], 0  ;;  %s1389_s0 = inlined_call_operand.vmem [shape: f32[2,4,256], index: 0, kind: input, shape index: {}]   ;;  %s1390_s1 = inlined_call_operand.vmem [shape: f32[16,4], index: 1, kind: input, shape index: {}]   ;;  %s1391_s2 = inlined_call_operand.vmem [shape: f32[16,1], index: 2, kind: input, shape index: {}]   ;;  %s1392_s3 = inlined_call_operand.hbm [shape: f32[9,16,256], index: 3, kind: input, shape index: {}]   ;;  %s1393_s4 = inlined_call_operand.vmem [shape: f32[16,1], index: 4, kind: input, shape index: {}]   ;;  %s1394_s5 = inlined_call_operand.vmem [shape: f32[4,16], index: 5, kind: input, shape index: {}]   ;;  %s1395_s6 = inlined_call_operand.vmem [shape: f32[4,1], index: 6, kind: input, shape index: {}]   ;;  %s1396_s7 = inlined_call_operand.hbm [shape: f32[2,4,256], index: 7, kind: output, shape index: {}]  }
   0x1   :  { %13 = vsyncpa [#allocation4], 0 }
   0x2   :  { %15 = vsyncpa [#allocation4 + $0x1], 0  ;;  %s1064_s24 = smov 0   ;;  %s1066_s25 = smov 0  }
   0x3   :  { %s1068_s26 = smov 0   ;;  %s1070_s27 = smov 0  }
   0x4 LB: > { %s1085_s28 = sadd.s32 4294967295, %s1007_s27   ;;  %s822_s29 = sadd.s32 4294967294, %s1007_s27   ;;  %s1007_s27 = sphi %s1070_s27, %s1412_s27   ;;  %s1003_s26 = sphi %s1068_s26, %s1411_s26   ;;  %s999_s25 = sphi %s1066_s25, %s1410_s25   ;;  %s995_s24 = sphi %s1064_s24, %s1409_s24  }
   0x5   : > { %s1089_s30 = sadd.s32 1, %s1007_s27   ;;  %s180_s8 = sadd.s32 1, %s1003_s26 }
   0x6   : > { %s177_s9 = ssub.s32 %s1007_s27, %s1089_s30  ;;  %p190_p0 = scmp.ne.s32.totalorder %s1003_s26, %s999_s25 }
   0x7   : > { %p178_p1 = scmp.eq.s32.totalorder %s177_s9, 0  ;;  %p191_p2 = scmp.eq.s32.totalorder %s1085_s28, 1 }
   0x8   : > { %p196_p3 = scmp.ne.s32.totalorder %s999_s25, %s995_s24  ;;  %p197_p4 = scmp.eq.s32.totalorder %s822_s29, 1 }
   0x9   : > { %s1100_s10 = scalar_select %p178_p1, %s1003_s26, %s180_s8  }
   0xa   : > { %p1102_p5 = por %p191_p2, %p190_p0  ;;  %p1106_p6 = por %p197_p4, %p196_p3 }
   0xb   : > { %p823_p7 = scmp.ge.s32.totalorder %s1007_s27, 1  ;;  %p204_p8 = scmp.lt.s32.totalorder %s1007_s27, 3 }
   0xc   : > { %s1400_s11 = scalar_select %p1102_p5, 1, 0 }
   0xd   : > { %s1401_s12 = scalar_select %p1106_p6, 1, 0 }
   0xe   : > { %p1397_p9 = scmp.eq.s32.totalorder %s1085_s28, 0  ;;  %p1113_p10 = pnand %p823_p7, %p204_p8 }
   0xf   : > { %s1009_s14 = smov [#allocation2]   ;;  %s913_s19 = scalar_lea.hbm %s1392_s3, 4608 }
  0x10   : > { %s1402_s13 = scalar_select %p1113_p10, 1, 0 }
  0x11   : > { %s222_s15 = sshll.u32 %s1009_s14, 4  ;;  %p853_p11 = pneg %p1113_p10  ;;  %s223_s15 = int_to_ptr.vmem [resolvable:$true] %s222_s15 }
  0x12   : > { %p914_p13 = scmp.ne.s32.totalorder %s1392_s3, %s913_s19  ;;  %p920_p3 = scmp.lt.u32.totalorder %s913_s19, %s1392_s3 }
  0x13   : > { %p1121_p12 = pnand %p1397_p9, %p853_p11 }
  0x15   : > { %p915_p0 = pneg %p1121_p12 }
  0x17   : > { %p916_p1 = pnand %p915_p0, %p914_p13 }
  0x19   : > { %p917_p2 = pneg %p916_p1 }
  0x1b   : > { %p922_p4 = pnand %p920_p3, %p917_p2 }
  0x1d   : > { %925 = shalt.err (!%p922_p4)
}
  0x1e   : > { %s926_s29 = scalar_lea.vmem %s223_s15, 4608  ;;  %p934_p9 = scmp.lt.s32.totalorder %s223_s15, %s223_s15 }
  0x1f   : > { %p927_p7 = scmp.ne.s32.totalorder %s223_s15, %s926_s29  ;;  %p935_p6 = scmp.lt.s32.totalorder %s926_s29, %s926_s29 }
  0x21   : > { %p929_p8 = pnand %p927_p7, %p915_p0  ;;  %p936_p5 = por %p935_p6, %p934_p9 }
  0x23   : > { %p930_p11 = pneg %p929_p8 }
  0x25   : > { %p937_p10 = pnand %p936_p5, %p930_p11 }
  0x27   : > { %940 = shalt.err (!%p937_p10)
}
  0x28   : > { %s1010_s8 = smov 256   ;;  %s1011_s9 = smov 16  }
  0x29   : > { %856 = dma.hbm_to_vmem [thread:$0]  (!%p1121_p12), %s1392_s3, 4608, %s223_s15, [#allocation3], %s1010_s8, %s1010_s8, %s1011_s9  }
  0x2a   : > { %p1404_p13 = scmp.ne.s32.totalorder %s1402_s13, 0 }
  0x2b   : > { %p1405_p1 = scmp.eq.s32.totalorder (!%p1404_p13), %s1085_s28, 0 }
  0x2c   : > { %255 = sbr.rel (%p1404_p13) target bundleno = 708 (0x2c4), region = 48 }
  0x33   : > { %986 = dma.done.wait (%p1405_p1), [#allocation3], 4608   ;;  %p1406_p0 = pmov %p1405_p1 }
  0x34   : > { %p287_p5 = scmp.lt.s32.totalorder %s1085_s28, 1  ;;  %v1012_v0 = vmov 0.0   ;;  %v1013_v1 = vmov 0   ;;  %vm316_vm0 = vcmask 1043456   ;;  %v295_v4 = vld [vmem:[%s1391_s2] sm:$0xff]  ;;  %vm309_vm1 = vcmask 31744  }
  0x35   : > { %988 = vsyncadd (%p1406_p0), [#allocation3], 4294962688  ;;  %385 = vmatprep.mubr.f32.mxu0 %v1012_v0  ;;  %709 = vmatprep.mubr.f32.mxu1 %v1012_v0  ;;  %v442_v5 = vld [vmem:[%s1393_s4] sm:$0xff]  ;;  %v296_v7 = vld [vmem:[%s1391_s2 + $0x8] sm:$0xff]  ;;  %s1014_s13 = smov 17   ;;  %s1016_s20 = smov 15   ;;  %v462_v44 = vlaneseq }
  0x36   : > { %s288_s16 = scalar_select %p287_p5, %s1085_s28, 1  ;;  %910 = vset.pattern.permute.xlu0 %v1013_v1  ;;  %911 = vset.pattern.permute.xlu1 %v1013_v1  ;;  %v293_v6 = vld [vmem:[%s1390_s1] sm:$0xff]  ;;  %v443_v8 = vld [vmem:[%s1393_s4 + $0x8] sm:$0xff]  ;;  %v408_v54 = vld [vmem:[#allocation2 + $0x10] sm:$0xff]  ;;  %vm641_vm10 = vcmask 130048  }
  0x37   : > { %299 = vperm.xlu0 %910, %v295_v4   ;;  %446 = vperm.xlu1 %911, %v442_v5   ;;  %v294_v9 = vld [vmem:[%s1390_s1 + $0x8] sm:$0xff]  ;;  %s1017_s21 = smov 1   ;;  %s1018_s22 = smov 127   ;;  %v721_v28 = vld [vmem:[%s1395_s6] sm:$0xf]  ;;  %v1243_v47 = vand.u32 127, %v462_v44 }
  0x38   : > { %s841_s15 = sshll.u32 %s288_s16, 3  ;;  %s1019_s23 = smov 113   ;;  %v406_v50 = vld [vmem:[#allocation2] sm:$0xff]  ;;  %v407_v51 = vld [vmem:[#allocation2 + $0x8] sm:$0xff]  ;;  %v409_v55 = vld [vmem:[#allocation2 + $0x18] sm:$0xff] }
  0x39   : > { %s291_s19 = scalar_lea.vmem %s1389_s0, %s841_s15  ;;  %s1020_s29 = smov 112   ;;  %vm464_vm2 = vcmp.lt.s32.totalorder %v1243_v47, 17  ;;  %vm485_vm3 = vcmp.lt.s32.totalorder %v1243_v47, 16  ;;  %v410_v60 = vld [vmem:[#allocation2 + $0x20] sm:$0xff]  ;;  %v411_v61 = vld [vmem:[#allocation2 + $0x28] sm:$0xff]  ;;  %vm506_vm4 = vcmp.lt.s32.totalorder %v1243_v47, 15 }
  0x3a   : > { %v1152_v2 = vld [vmem:[%s291_s19] sm:$0xff]  ;;  %s1015_s19 = smov 16   ;;  %s1021_s8 = smov 111   ;;  %vm527_vm5 = vcmp.lt.s32.totalorder %v1243_v47, 1  ;;  %vm556_vm6 = vcmp.lt.s32.totalorder %v1243_v47, 127  ;;  %vm577_vm7 = vcmp.lt.s32.totalorder %v1243_v47, 113 }
  0x3b   : > { %v308_v3 = vcombine.high %v1152_v2, %v1152_v2  ;;  %304 = vperm.xlu0 %910, %v296_v7   ;;  %451 = vperm.xlu1 %911, %v443_v8   ;;  %v412_v7 = vld [vmem:[#allocation2 + $0x30] sm:$0xff]  ;;  %v413_v8 = vld [vmem:[#allocation2 + $0x38] sm:$0xff]  ;;  %vm598_vm8 = vcmp.lt.s32.totalorder %v1243_v47, 112  ;;  %vm619_vm9 = vcmp.lt.s32.totalorder %v1243_v47, 111  ;;  %s284_s15 = sand.u32 1, %s999_s25   ;;  %p1407_p9 = scmp.ne.s32.totalorder %s1400_s11, 0 }
  0x3c   : > { %s828_s18 = sshll.u32 %s284_s15, 3 }
  0x3d   : > { %831 = vmatprep.subr.msk.mxu0 %vm316_vm0, %v308_v3 }
  0x3e   : > { %832 = vmatpush1.msk.msra.mxu0 %vm316_vm0, %v1152_v2 }
  0x3f   : > { %833 = vmatmul.mubr.msk.f32.vlgmr.msra.gmra.mrb[0].mxu0 %vm309_vm1, %v293_v6 }
  0x40   : > { %391 = vmatprep.mubr.f32.mxu0 %v1012_v0 }
  0x43   : > { %834 = vmatmul.mubr.msk.f32.gmra.mrb[2].mxu0 %vm309_vm1, %v294_v9 }
  0xb6   : > { %v300_v10 = vpop.permute.xlu0 %299  ;;  %v447_v29 = vpop.permute.xlu1 %446 }
  0xba   : > { %v305_v15 = vpop.permute.xlu0 %304  ;;  %v452_v30 = vpop.permute.xlu1 %451 }
 0x112   : > { %v387_v11 = vpop.f32.mrb[0].mxu0 }
 0x113   : > { %v388_v12 = vadd.f32 %v387_v11, %v300_v10  ;;  %v389_v13 = vpop.f32.mrb[1].mxu0 }
 0x114   : > { %v390_v22 = vadd.f32 %v389_v13, %v300_v10  ;;  %v414_v13 = vld [vmem:[#allocation2 + $0x40] sm:$0xff] }
 0x115   : > { %v398_v14 = vmax.f32 %v388_v12, 0.0 }
 0x116   : > { %v393_v16 = vpop.f32.mrb[2].mxu0  ;;  %v399_v23 = vmax.f32 %v390_v22, 0.0 }
 0x117   : > { %v1175_v17 = vmin.f32 %v398_v14, 6.0  ;;  %v394_v18 = vadd.f32 %v393_v16, %v305_v15  ;;  %v395_v19 = vpop.f32.mrb[3].mxu0  ;;  %v415_v14 = vld [vmem:[#allocation2 + $0x48] sm:$0xff] }
 0x118   : > { %v396_v24 = vadd.f32 %v395_v19, %v305_v15  ;;  %v1196_v25 = vmin.f32 %v399_v23, 6.0 }
 0x119   : > { %v400_v20 = vmax.f32 %v394_v18, 0.0  ;;  %454 = vrot.lane.b32.xlu0 %v1175_v17, %s1014_s13 }
 0x11a   : > { %v401_v26 = vmax.f32 %v396_v24, 0.0 }
 0x11b   : > { %v1179_v21 = vmin.f32 %v400_v20, 6.0  ;;  %v416_v20 = vld [vmem:[#allocation2 + $0x50] sm:$0xff] }
 0x11c   : > { %v1201_v27 = vmin.f32 %v401_v26, 6.0 }
 0x11d   : > { %456 = vrot.lane.b32.xlu1 %v1179_v21, %s1014_s13  ;;  %477 = vrot.lane.b32.xlu0 %v1175_v17, %s1015_s19 }
 0x121   : > { %479 = vrot.lane.b32.xlu1 %v1179_v21, %s1015_s19  ;;  %498 = vrot.lane.b32.xlu0 %v1175_v17, %s1016_s20 }
 0x125   : > { %500 = vrot.lane.b32.xlu1 %v1179_v21, %s1016_s20  ;;  %519 = vrot.lane.b32.xlu0 %v1175_v17, %s1017_s21 }
 0x129   : > { %521 = vrot.lane.b32.xlu1 %v1179_v21, %s1017_s21  ;;  %548 = vrot.lane.b32.xlu0 %v1175_v17, %s1018_s22 }
 0x12d   : > { %550 = vrot.lane.b32.xlu1 %v1179_v21, %s1018_s22  ;;  %569 = vrot.lane.b32.xlu0 %v1175_v17, %s1019_s23 }
 0x131   : > { %571 = vrot.lane.b32.xlu1 %v1179_v21, %s1019_s23  ;;  %590 = vrot.lane.b32.xlu0 %v1175_v17, %s1020_s29 }
 0x135   : > { %592 = vrot.lane.b32.xlu1 %v1179_v21, %s1020_s29  ;;  %611 = vrot.lane.b32.xlu0 %v1175_v17, %s1021_s8 }
 0x139   : > { %613 = vrot.lane.b32.xlu1 %v1179_v21, %s1021_s8  ;;  %458 = vrot.lane.b32.xlu0 %v1196_v25, %s1014_s13 }
 0x13d   : > { %460 = vrot.lane.b32.xlu1 %v1201_v27, %s1014_s13  ;;  %481 = vrot.lane.b32.xlu0 %v1196_v25, %s1015_s19  ;;  %s842_s13 = sshll.u32 %s1085_s28, 7  ;;  %s1023_s28 = smov [#allocation5]  }
 0x13e   : > { %s945_s9 = sshll.u32 %s1023_s28, 4  ;;  %s946_s9 = int_to_ptr.vmem [resolvable:$false] %s945_s9 }
 0x13f   : > { %s947_s14 = scalar_lea.vmem %s946_s9, 256 }
 0x141   : > { %483 = vrot.lane.b32.xlu1 %v1201_v27, %s1015_s19  ;;  %502 = vrot.lane.b32.xlu0 %v1196_v25, %s1016_s20  ;;  %s286_s19 = scalar_lea.vmem [#allocation5], %s828_s18 }
 0x145   : > { %504 = vrot.lane.b32.xlu1 %v1201_v27, %s1016_s20  ;;  %523 = vrot.lane.b32.xlu0 %v1196_v25, %s1017_s21  ;;  %s751_s20 = sshll.u32 %s286_s19, 4  ;;  %s1349_s20 = int_to_ptr.vmem [resolvable:$true] %s751_s20 }
 0x146   : > { %p948_p2 = scmp.lt.s32.totalorder %s1349_s20, %s946_s9 }
 0x149   : > { %525 = vrot.lane.b32.xlu1 %v1201_v27, %s1017_s21  ;;  %552 = vrot.lane.b32.xlu0 %v1196_v25, %s1018_s22 }
 0x14d   : > { %554 = vrot.lane.b32.xlu1 %v1201_v27, %s1018_s22  ;;  %573 = vrot.lane.b32.xlu0 %v1196_v25, %s1019_s23 }
 0x151   : > { %575 = vrot.lane.b32.xlu1 %v1201_v27, %s1019_s23  ;;  %594 = vrot.lane.b32.xlu0 %v1196_v25, %s1020_s29  ;;  %s1347_s23 = scalar_lea.hbm %s1396_s7, %s842_s13 }
 0x155   : > { %596 = vrot.lane.b32.xlu1 %v1201_v27, %s1020_s29  ;;  %615 = vrot.lane.b32.xlu0 %v1196_v25, %s1021_s8  ;;  %s737_s29 = scalar_lea.sflag [#allocation4], %s284_s15 }
 0x159   : > { %617 = vrot.lane.b32.xlu1 %v1201_v27, %s1021_s8  ;;  %724 = vperm.xlu0 %910, %v721_v28   ;;  %v417_v28 = vld [vmem:[#allocation2 + $0x58] sm:$0xff]  ;;  %s941_s8 = scalar_lea.vmem %s1349_s20, 128 }
 0x15a   : > { %p942_p6 = scmp.ne.s32.totalorder %s1349_s20, %s941_s8  ;;  %p949_p3 = scmp.lt.s32.totalorder %s947_s14, %s941_s8 }
 0x15c   : > { %p943_p10 = pnand %p942_p6, %p1407_p9  ;;  %p950_p4 = por %p949_p3, %p948_p2 }
 0x15e   : > { %p944_p12 = pneg %p943_p10 }
 0x160   : > { %p951_p7 = pnand %p950_p4, %p944_p12 }
 0x18b   : > { %v455_v31 = vpop.permute.xlu0 %454 }
 0x18f   : > { %v457_v32 = vpop.permute.xlu1 %456  ;;  %v478_v33 = vpop.permute.xlu0 %477 }
 0x193   : > { %v480_v34 = vpop.permute.xlu1 %479  ;;  %v499_v35 = vpop.permute.xlu0 %498 }
 0x197   : > { %v1222_v36 = vpop.permute.xlu1 %500  ;;  %v1224_v37 = vpop.permute.xlu0 %519 }
 0x19b   : > { %v1226_v38 = vpop.permute.xlu1 %521  ;;  %v1228_v39 = vpop.permute.xlu0 %548 }
 0x19f   : > { %v1230_v40 = vpop.permute.xlu1 %550  ;;  %v1232_v41 = vpop.permute.xlu0 %569 }
 0x1a3   : > { %v1234_v42 = vpop.permute.xlu1 %571  ;;  %v1236_v43 = vpop.permute.xlu0 %590 }
 0x1a7   : > { %v1238_v45 = vpop.permute.xlu1 %592  ;;  %v1240_v46 = vpop.permute.xlu0 %611 }
 0x1ab   : > { %v1245_v48 = vpop.permute.xlu1 %613  ;;  %v459_v49 = vpop.permute.xlu0 %458 }
 0x1ac   : > { %v465_v52 = vsel %vm464_vm2, %v455_v31, %v459_v49  ;;  %v467_v53 = vsel %vm464_vm2, %v459_v49, %v455_v31  ;;  %v418_v31 = vld [vmem:[#allocation2 + $0x60] sm:$0xff] }
 0x1ad   : > { %v469_v0 = vmul.f32 %v467_v53, %v406_v50  ;;  %v470_v1 = vmul.f32 %v465_v52, %v407_v51 }
 0x1af   : > { %v461_v56 = vpop.permute.xlu1 %460  ;;  %v482_v57 = vpop.permute.xlu0 %481  ;;  %v473_v18 = vadd.f32 %v469_v0, %v447_v29  ;;  %v474_v19 = vadd.f32 %v470_v1, %v447_v29  ;;  %v423_v1 = vld [vmem:[#allocation2 + $0x88] sm:$0xff] }
 0x1b0   : > { %v466_v58 = vsel %vm464_vm2, %v457_v32, %v461_v56  ;;  %v468_v59 = vsel %vm464_vm2, %v461_v56, %v457_v32  ;;  %v486_v62 = vsel %vm485_vm3, %v478_v33, %v482_v57  ;;  %v488_v63 = vsel %vm485_vm3, %v482_v57, %v478_v33  ;;  %v419_v32 = vld [vmem:[#allocation2 + $0x68] sm:$0xff] }
 0x1b1   : > { %v471_v3 = vmul.f32 %v468_v59, %v408_v54  ;;  %v472_v4 = vmul.f32 %v466_v58, %v409_v55  ;;  %v490_v5 = vmul.f32 %v488_v63, %v410_v60  ;;  %v491_v6 = vmul.f32 %v486_v62, %v411_v61  ;;  %v420_v60 = vld [vmem:[#allocation2 + $0x70] sm:$0xff]  ;;  %v421_v61 = vld [vmem:[#allocation2 + $0x78] sm:$0xff] }
 0x1b3   : > { %v484_v9 = vpop.permute.xlu1 %483  ;;  %v503_v10 = vpop.permute.xlu0 %502  ;;  %v475_v22 = vadd.f32 %v471_v3, %v452_v30  ;;  %v476_v23 = vadd.f32 %v472_v4, %v452_v30  ;;  %v494_v33 = vadd.f32 %v490_v5, %v473_v18 }
 0x1b4   : > { %v487_v11 = vsel %vm485_vm3, %v480_v34, %v484_v9  ;;  %v489_v12 = vsel %vm485_vm3, %v484_v9, %v480_v34  ;;  %v507_v15 = vsel %vm506_vm4, %v499_v35, %v503_v10  ;;  %v509_v16 = vsel %vm506_vm4, %v503_v10, %v499_v35 }
 0x1b5   : > { %v492_v24 = vmul.f32 %v489_v12, %v412_v7  ;;  %v493_v26 = vmul.f32 %v487_v11, %v413_v8  ;;  %v495_v34 = vadd.f32 %v491_v6, %v474_v19  ;;  %v511_v49 = vmul.f32 %v509_v16, %v414_v13  ;;  %v424_v7 = vld [vmem:[#allocation2 + $0x90] sm:$0xff]  ;;  %v425_v12 = vld [vmem:[#allocation2 + $0x98] sm:$0xff]  ;;  %v426_v13 = vld [vmem:[#allocation2 + $0xa0] sm:$0xff] }
 0x1b6   : > { %v512_v50 = vmul.f32 %v507_v15, %v415_v14  ;;  %v427_v14 = vld [vmem:[#allocation2 + $0xa8] sm:$0xff]  ;;  %v541_v15 = vmul.f32 %v423_v1, %v1196_v25  ;;  %v429_v25 = vld [vmem:[#allocation2 + $0xb8] sm:$0xff]  ;;  %v436_v1 = vld [vmem:[#allocation2 + $0xf0] sm:$0xff] }
 0x1b7   : > { %v505_v51 = vpop.permute.xlu1 %504  ;;  %v524_v52 = vpop.permute.xlu0 %523  ;;  %v496_v58 = vadd.f32 %v492_v24, %v475_v22  ;;  %v497_v59 = vadd.f32 %v493_v26, %v476_v23  ;;  %v515_v62 = vadd.f32 %v511_v49, %v494_v33  ;;  %v428_v22 = vld [vmem:[#allocation2 + $0xb0] sm:$0xff]  ;;  %v542_v24 = vmul.f32 %v424_v7, %v1179_v21  ;;  %v438_v7 = vld [vmem:[#allocation2 + $0x100] sm:$0xff] }
 0x1b8   : > { %v508_v29 = vsel %vm506_vm4, %v1222_v36, %v505_v51  ;;  %v510_v35 = vsel %vm506_vm4, %v505_v51, %v1222_v36  ;;  %v528_v30 = vsel %vm527_vm5, %v1224_v37, %v524_v52  ;;  %v530_v53 = vsel %vm527_vm5, %v524_v52, %v1224_v37  ;;  %v422_v36 = vld [vmem:[#allocation2 + $0x80] sm:$0xff] }
 0x1b9   : > { %v513_v54 = vmul.f32 %v510_v35, %v416_v20  ;;  %v514_v55 = vmul.f32 %v508_v29, %v417_v28  ;;  %v532_v56 = vmul.f32 %v530_v53, %v418_v31  ;;  %v533_v57 = vmul.f32 %v528_v30, %v419_v32  ;;  %v430_v31 = vld [vmem:[#allocation2 + $0xc0] sm:$0xff]  ;;  %v431_v32 = vld [vmem:[#allocation2 + $0xc8] sm:$0xff] }
 0x1ba   : > { %v516_v63 = vadd.f32 %v512_v50, %v495_v34  ;;  %v540_v16 = vmul.f32 %v422_v36, %v1175_v17  ;;  %v543_v17 = vmul.f32 %v425_v12, %v1201_v27 }
 0x1bb   : > { %v526_v0 = vpop.permute.xlu1 %525  ;;  %v553_v3 = vpop.permute.xlu0 %552  ;;  %v517_v4 = vadd.f32 %v513_v54, %v496_v58  ;;  %v518_v5 = vadd.f32 %v514_v55, %v497_v59  ;;  %v536_v8 = vadd.f32 %v532_v56, %v515_v62  ;;  %v434_v54 = vld [vmem:[#allocation2 + $0xe0] sm:$0xff]  ;;  %v435_v55 = vld [vmem:[#allocation2 + $0xe8] sm:$0xff]  ;;  %v433_v58 = vld [vmem:[#allocation2 + $0xd8] sm:$0xff] }
 0x1bc   : > { %v529_v37 = vsel %vm527_vm5, %v1226_v38, %v526_v0  ;;  %v531_v6 = vsel %vm527_vm5, %v526_v0, %v1226_v38  ;;  %v537_v9 = vadd.f32 %v533_v57, %v516_v63  ;;  %v557_v18 = vsel %vm556_vm6, %v1228_v39, %v553_v3  ;;  %v432_v57 = vld [vmem:[#allocation2 + $0xd0] sm:$0xff] }
 0x1bd   : > { %v534_v10 = vmul.f32 %v531_v6, %v420_v60  ;;  %v535_v11 = vmul.f32 %v529_v37, %v421_v61  ;;  %v559_v38 = vsel %vm556_vm6, %v553_v3, %v1228_v39  ;;  %v544_v21 = vadd.f32 %v540_v16, %v536_v8  ;;  %v437_v3 = vld [vmem:[#allocation2 + $0xf8] sm:$0xff]  ;;  %v439_v8 = vld [vmem:[#allocation2 + $0x108] sm:$0xff] }
 0x1be   : > { %v545_v33 = vadd.f32 %v541_v15, %v537_v9  ;;  %v561_v34 = vmul.f32 %v557_v18, %v426_v13  ;;  %v562_v49 = vmul.f32 %v559_v38, %v427_v14 }
 0x1bf   : > { %v538_v19 = vadd.f32 %v534_v10, %v517_v4  ;;  %v539_v20 = vadd.f32 %v535_v11, %v518_v5  ;;  %v555_v23 = vpop.permute.xlu1 %554  ;;  %v574_v26 = vpop.permute.xlu0 %573 }
 0x1c0   : > { %v558_v28 = vsel %vm556_vm6, %v1230_v40, %v555_v23  ;;  %v560_v39 = vsel %vm556_vm6, %v555_v23, %v1230_v40  ;;  %v578_v27 = vsel %vm577_vm7, %v1232_v41, %v574_v26  ;;  %v580_v52 = vsel %vm577_vm7, %v574_v26, %v1232_v41  ;;  %v441_v23 = vld [vmem:[#allocation2 + $0x118] sm:$0xff] }
 0x1c1   : > { %v547_v50 = vadd.f32 %v543_v17, %v539_v20  ;;  %v546_v51 = vadd.f32 %v542_v24, %v538_v19  ;;  %v563_v29 = vmul.f32 %v558_v28, %v428_v22  ;;  %v564_v40 = vmul.f32 %v560_v39, %v429_v25  ;;  %v440_v22 = vld [vmem:[#allocation2 + $0x110] sm:$0xff] }
 0x1c2   : > { %v582_v35 = vmul.f32 %v578_v27, %v430_v31  ;;  %v583_v30 = vmul.f32 %v580_v52, %v431_v32  ;;  %v565_v62 = vadd.f32 %v561_v34, %v544_v21  ;;  %v566_v63 = vadd.f32 %v562_v49, %v545_v33 }
 0x1c3   : > { %v576_v53 = vpop.permute.xlu1 %575  ;;  %v595_v56 = vpop.permute.xlu0 %594  ;;  %v567_v4 = vadd.f32 %v563_v29, %v546_v51  ;;  %v568_v5 = vadd.f32 %v564_v40, %v547_v50 }
 0x1c4   : > { %v579_v59 = vsel %vm577_vm7, %v1234_v42, %v576_v53  ;;  %v581_v60 = vsel %vm577_vm7, %v576_v53, %v1234_v42  ;;  %v599_v41 = vsel %vm598_vm8, %v1236_v43, %v595_v56  ;;  %v601_v61 = vsel %vm598_vm8, %v595_v56, %v1236_v43 }
 0x1c5   : > { %v603_v0 = vmul.f32 %v599_v41, %v434_v54  ;;  %v604_v36 = vmul.f32 %v601_v61, %v435_v55  ;;  %v584_v37 = vmul.f32 %v579_v59, %v432_v57  ;;  %v585_v42 = vmul.f32 %v581_v60, %v433_v58 }
 0x1c6   : > { %v586_v10 = vadd.f32 %v582_v35, %v565_v62  ;;  %v587_v11 = vadd.f32 %v583_v30, %v566_v63  ;;  %v1022_v53 = vmov 839922192   ;;  %v730_v56 = vshrl.u32 %v462_v44, 7 }
 0x1c7   : > { %v597_v6 = vpop.permute.xlu1 %596  ;;  %v616_v9 = vpop.permute.xlu0 %615  ;;  %v588_v24 = vadd.f32 %v584_v37, %v567_v4  ;;  %v589_v26 = vadd.f32 %v585_v42, %v568_v5  ;;  %v727_v54 = vunpack.c.l.s4 %v1022_v53 }
 0x1c8   : > { %v600_v43 = vsel %vm598_vm8, %v1238_v45, %v597_v6  ;;  %v602_v12 = vsel %vm598_vm8, %v597_v6, %v1238_v45  ;;  %v620_v15 = vsel %vm619_vm9, %v1240_v46, %v616_v9  ;;  %v622_v16 = vsel %vm619_vm9, %v616_v9, %v1240_v46 }
 0x1c9   : > { %v605_v13 = vmul.f32 %v600_v43, %v436_v1  ;;  %v606_v14 = vmul.f32 %v602_v12, %v437_v3  ;;  %v607_v18 = vadd.f32 %v603_v0, %v586_v10  ;;  %v608_v38 = vadd.f32 %v604_v36, %v587_v11 }
 0x1ca   : > { %v624_v19 = vmul.f32 %v620_v15, %v438_v7  ;;  %v625_v20 = vmul.f32 %v622_v16, %v439_v8  ;;  %v728_v55 = vunpack.c.0.s8 %v727_v54 }
 0x1cb   : > { %v618_v25 = vpop.permute.xlu1 %617  ;;  %v609_v46 = vadd.f32 %v605_v13, %v588_v24  ;;  %v610_v31 = vadd.f32 %v606_v14, %v589_v26 }
 0x1cc   : > { %v621_v45 = vsel %vm619_vm9, %v1245_v48, %v618_v25  ;;  %v623_v17 = vsel %vm619_vm9, %v618_v25, %v1245_v48  ;;  %v629_v28 = vadd.f32 %v625_v20, %v608_v38  ;;  %v628_v39 = vadd.f32 %v624_v19, %v607_v18  ;;  %v640_v48 = vld [vmem:[%s1394_s5] sm:$0xf] }
 0x1cd   : > { %v626_v32 = vmul.f32 %v621_v45, %v440_v22  ;;  %v627_v33 = vmul.f32 %v623_v17, %v441_v23  ;;  %v731_v57 = vsub.s32 %v728_v55, %v730_v56 }
 0x1ce   : > { %v633_v34 = vmax.f32 %v629_v28, 0.0  ;;  %v632_v50 = vmax.f32 %v628_v39, 0.0 }
 0x1cf   : > { %v631_v21 = vadd.f32 %v627_v33, %v610_v31  ;;  %v630_v49 = vadd.f32 %v626_v32, %v609_v46 }
 0x1d0   : > { %v637_v52 = vmin.f32 %v633_v34, 6.0  ;;  %v636_v40 = vmin.f32 %v632_v50, 6.0 }
 0x1d1   : > { %v635_v51 = vmax.f32 %v631_v21, 0.0  ;;  %v634_v27 = vmax.f32 %v630_v49, 0.0 }
 0x1d3   : > { %v639_v29 = vmin.f32 %v635_v51, 6.0  ;;  %v638_v35 = vmin.f32 %v634_v27, 6.0 }
 0x1d5   : > { %v843_v30 = vpack.c.bf16 %v639_v29, %v637_v52  ;;  %v845_v47 = vpack.c.bf16 %v638_v35, %v636_v40 }
 0x1d7   : > { %844 = vmatprep.subr.bf16.mxu1 %v843_v30 }
 0x1d8   : > { %846 = vmatpush1.bf16.msra.mxu1 %v845_v47  ;;  %v725_v59 = vpop.permute.xlu0 %724 }
 0x1d9   : > { %v732_v61 = vrot.slane %v725_v59, %v731_v57 }
 0x1db   : > { %835 = vmatmul.mubr.msk.f32.vlgmr.msra.gmra.mrb[0].mxu1 %vm641_vm10, %v640_v48 }
 0x2ae   : > { %v711_v58 = vpop.f32.mrb[0].mxu1 }
 0x2af   : > { %v713_v60 = vpop.f32.mrb[1].mxu1 }
 0x2b0   : > { %v718_v41 = vcombine.low %v711_v58, %v713_v60 }
 0x2b2   : > { %v720_v62 = vadd.f32 %v718_v41, %v1152_v2 }
 0x2b4   : > { %v734_v63 = vadd.f32 %v732_v61, %v720_v62 }
 0x2b6   : > { %735 = vst [vmem:[%s286_s19] sm:$0xff] %v734_v63 }
 0x2b7   : > { %954 = shalt.err (!%p951_p7)
}
 0x2b8   : > { %s955_s17 = scalar_lea.hbm %s1347_s23, 128  ;;  %s959_s18 = scalar_lea.hbm %s1396_s7, 256 }
 0x2b9   : > { %p956_p8 = scmp.ne.s32.totalorder %s1347_s23, %s955_s17  ;;  %p960_p1 = scmp.lt.u32.totalorder %s1347_s23, %s1396_s7 }
 0x2ba   : > { %p961_p0 = scmp.lt.u32.totalorder %s959_s18, %s955_s17  ;;  %p963_p6 = scmp.lt.u32.totalorder %s955_s17, %s1347_s23 }
 0x2bb   : > { %p957_p11 = pnand %p956_p8, %p1407_p9 }
 0x2bc   : > { %p962_p5 = por %p961_p0, %p960_p1 }
 0x2bd   : > { %p958_p13 = pneg %p957_p11 }
 0x2be   : > { %p964_p10 = por %p963_p6, %p962_p5 }
 0x2c0   : > { %p965_p12 = pnand %p964_p10, %p958_p13 }
 0x2c2   : > { %968 = shalt.err (!%p965_p12)
}
 0x2c3   : > { %851 = dma.vmem_to_hbm [thread:$0]  (%p1407_p9), %s1349_s20, 128, %s1347_s23, %s737_s29  }
 0x2c4 PF: > { %p863_p2 = scmp.ge.s32.totalorder %s1007_s27, 2  ;;  %s763_s21 = sand.u32 1, %s995_s24  }
 0x2c5   : > { %p1408_p3 = scmp.ne.s32.totalorder %s1401_s12, 0  ;;  %s764_s22 = scalar_lea.sflag [#allocation4], %s763_s21 }
 0x2c7   : > { %p858_p4 = pnand %p863_p2, %p1408_p3 }
 0x2c9   : > { %990 = dma.done.wait (!%p858_p4), %s764_s22, 128  }
 0x2ca   : > { %992 = vsyncadd (!%p858_p4), %s764_s22, 4294967168  ;;  %p18_p7 = scmp.ge.s32.totalorder %s1089_s30, 4   ;;  %s1409_s24 = smov %s999_s25 }
 0x2cb   : > { %s1410_s25 = smov %s1003_s26  ;;  %s1411_s26 = smov %s1100_s10 }
 0x2cc   : > { %s1412_s27 = smov %s1089_s30  ;;  %20 = sbr.rel (!%p18_p7) target bundleno = 4 (0x4), region = 88 }
 0x2d3   :  { %769 = vsyncpa [#allocation3], 1 }
 0x2d4   :  { %771 = vsyncpa [#allocation3 + $0x1], 1 }
 0x2d5   :  { %772 = vsyncpa [#allocation4], 1 }
 0x2d6   :  { %774 = vsyncpa [#allocation4 + $0x1], 1 }

</bundles_post_ra>
